<compile_context>
chip_gen: v7x
topology: tpu7x:2x2x1
jax: 0.10.0
libtpu: 0.0.40
codegen_flags: <defaults>
</compile_context>

<pallas_src>
import jax
import jax.numpy as jnp
from jax import lax
from jax.experimental import pallas as pl
from jax.experimental.pallas import tpu as pltpu

# ----- small, module-consistent shapes -----
B = 2        # batch
S = 16       # raw observation dim (state_encoder input)
D = 32       # state_encoder.output_size (== input_size of the heads)
H = 32       # hidden_size
N_MOVE = 5   # Discrete head: action_space["move"].n
A_TGT = 3    # Box head:      action_space["target"].shape[0]

LANES = 128

# ----- weight-slab row offsets (all row counts padded to multiples of 8) -----
ROW_WE = 0       # we                    (S, D)       rows   0..15
ROW_WENC = 16    # [wm1 | wt1b]          (D, 2H)      rows  16..47
ROW_WM2 = 48     # wm2                   (H, N_MOVE)  rows  48..79
ROW_AE1 = 80     # ae1                   (N_MOVE, H)  rows  80..87 (padded)
ROW_WFOLD = 88   # ae2 @ wt1a            (H, H)       rows  88..119
ROW_WT2 = 120    # wt2                   (H, A_TGT)   rows 120..151
N_WROWS = 152

# ----- bias-slab rows -----
BROW_BE = 0       # be                       (D,)
BROW_BENC = 1     # [bm1 | aeb2@wt1a + bt1]  (2H,)
BROW_BM2 = 2      # bm2                      (N_MOVE,)
BROW_AEB1 = 3     # aeb1                     (H,)
BROW_BT2 = 4      # bt2                      (A_TGT,)
BROW_LOGSTD = 5   # logstd                   (A_TGT,)
N_BROWS = 8

# ----- packed output slab lane offsets -----
OUT_LOGP = 0      # (B, N_MOVE)
OUT_MU = 8        # (B, A_TGT)
OUT_AMOVE = 16    # (B, 1) stored as f32
OUT_STD = 24      # (1, A_TGT)
OUT_ROWS = 8


def actor_kernel(states_ref, w_ref, b_ref, out_ref):
    f32 = jnp.float32
    x = states_ref[...]                                                  # (B, S)

    # ---- state encoder (synthetic): relu(Linear) ----
    we = w_ref[ROW_WE:ROW_WE + S, 0:D]
    be = b_ref[BROW_BE:BROW_BE + 1, 0:D]
    enc = jnp.maximum(jnp.dot(x, we, preferred_element_type=f32) + be, 0.0)  # (B, D)

    # ---- fused matmul: enc @ [wm1 | wt1b] + [bm1 | b'] ----
    wenc = w_ref[ROW_WENC:ROW_WENC + D, 0:2 * H]
    benc = b_ref[BROW_BENC:BROW_BENC + 1, 0:2 * H]
    y = jnp.dot(enc, wenc, preferred_element_type=f32) + benc           # (B, 2H)
    h = jnp.maximum(y[:, 0:H], 0.0)                                     # move hidden
    enc_contrib = y[:, H:2 * H]                                         # enc@wt1b + b'

    # ---- Discrete head "move": logits + log_softmax ----
    wm2 = w_ref[ROW_WM2:ROW_WM2 + H, 0:N_MOVE]
    bm2 = b_ref[BROW_BM2:BROW_BM2 + 1, 0:N_MOVE]
    logits = jnp.dot(h, wm2, preferred_element_type=f32) + bm2          # (B, N_MOVE)

    m = jnp.max(logits, axis=-1, keepdims=True)
    lse = jnp.log(jnp.sum(jnp.exp(logits - m), axis=-1, keepdims=True)) + m
    logp = logits - lse

    # mode() == argmax(logits) (first max index on ties)
    iota = lax.broadcasted_iota(jnp.int32, logits.shape, 1)
    cand = jnp.where(logits == m, iota, jnp.int32(N_MOVE))
    a_move = jnp.min(cand, axis=-1, keepdims=True)                      # (B, 1) int32

    # ---- action encoding for "move": VPU row-select from ae1 (no MXU) ----
    aeb1 = b_ref[BROW_AEB1:BROW_AEB1 + 1, 0:H]
    he_pre = jnp.zeros((B, H), f32)
    for i in range(N_MOVE):
        sel = jnp.where(a_move == i, 1.0, 0.0).astype(f32)              # (B, 1)
        he_pre = he_pre + sel * w_ref[ROW_AE1 + i:ROW_AE1 + i + 1, 0:H]
    he = jnp.maximum(he_pre + aeb1, 0.0)                                # (B, H)

    # ---- Box head "target" with folded ae2@wt1a ----
    wfold = w_ref[ROW_WFOLD:ROW_WFOLD + H, 0:H]
    ht = jnp.maximum(
        jnp.dot(he, wfold, preferred_element_type=f32) + enc_contrib, 0.0)
    wt2 = w_ref[ROW_WT2:ROW_WT2 + H, 0:A_TGT]
    bt2 = b_ref[BROW_BT2:BROW_BT2 + 1, 0:A_TGT]
    mu = jnp.dot(ht, wt2, preferred_element_type=f32) + bt2             # (B, A_TGT)

    std = jnp.exp(b_ref[BROW_LOGSTD:BROW_LOGSTD + 1, 0:A_TGT])          # (1, A_TGT)

    # ---- single lane-dense output slab (one writeback DMA) ----
    out_ref[...] = jnp.zeros((OUT_ROWS, LANES), f32)
    out_ref[0:B, OUT_LOGP:OUT_LOGP + N_MOVE] = logp
    out_ref[0:B, OUT_MU:OUT_MU + A_TGT] = mu
    out_ref[0:B, OUT_AMOVE:OUT_AMOVE + 1] = a_move.astype(f32)
    out_ref[0:1, OUT_STD:OUT_STD + A_TGT] = std


def pack_params(params):
    """Constant-fold and pack all weights/biases into two lane-dense slabs (done once)."""
    f32 = jnp.float32
    w_fold = params["ae2"] @ params["wt1a"]                              # (H, H)
    b_prime = params["aeb2"] @ params["wt1a"] + params["bt1"]            # (1, H)
    w_enc = jnp.concatenate([params["wm1"], params["wt1b"]], axis=1)     # (D, 2H)
    b_enc = jnp.concatenate([params["bm1"], b_prime], axis=1)            # (1, 2H)

    def pad(w, rows):
        r, c = w.shape
        return jnp.pad(w.astype(f32), ((0, rows - r), (0, LANES - c)))

    wslab = jnp.concatenate([
        pad(params["we"], 16),
        pad(w_enc, 32),
        pad(params["wm2"], 32),
        pad(params["ae1"], 8),
        pad(w_fold, 32),
        pad(params["wt2"], 32),
    ], axis=0)                                                           # (152, 128)

    bslab = jnp.zeros((N_BROWS, LANES), f32)
    bslab = bslab.at[BROW_BE, :D].set(params["be"][0])
    bslab = bslab.at[BROW_BENC, :2 * H].set(b_enc[0])
    bslab = bslab.at[BROW_BM2, :N_MOVE].set(params["bm2"][0])
    bslab = bslab.at[BROW_AEB1, :H].set(params["aeb1"][0])
    bslab = bslab.at[BROW_BT2, :A_TGT].set(params["bt2"][0])
    bslab = bslab.at[BROW_LOGSTD, :A_TGT].set(params["logstd"][0])
    return wslab, bslab


def actor_forward(states, wslab, bslab, rnn_hxs):
    """Returns (actions, distributions, rnn_hxs) like the torch module (deterministic)."""
    vmem = pl.BlockSpec(memory_space=pltpu.MemorySpace.VMEM)
    out = pl.pallas_call(
        actor_kernel,
        out_shape=jax.ShapeDtypeStruct((OUT_ROWS, LANES), jnp.float32),
        in_specs=[vmem, vmem, vmem],
        out_specs=vmem,
    )(states, wslab, bslab)

    logp_move = out[0:B, OUT_LOGP:OUT_LOGP + N_MOVE]
    mu = out[0:B, OUT_MU:OUT_MU + A_TGT]
    a_move = out[0:B, OUT_AMOVE:OUT_AMOVE + 1].astype(jnp.int32)
    std = jnp.broadcast_to(out[0:1, OUT_STD:OUT_STD + A_TGT], (B, A_TGT))

    actions = {"move": a_move, "target": mu}
    distributions = {
        "move": {"log_probs": logp_move},        # FixedCategorical(logits=log_softmax)
        "target": {"mu": mu, "std": std},        # FixedNormal(mu, std) (std expanded)
    }
    return actions, distributions, rnn_hxs


def _reference(states, params):
    """Plain-JAX reference of the original (unfolded) forward."""
    relu = lambda v: jnp.maximum(v, 0.0)
    enc = relu(states @ params["we"] + params["be"])
    h = relu(enc @ params["wm1"] + params["bm1"])
    logits = h @ params["wm2"] + params["bm2"]
    logp = logits - jax.scipy.special.logsumexp(logits, axis=-1, keepdims=True)
    a_move = jnp.argmax(logits, axis=-1).astype(jnp.int32)[:, None]
    onehot = jax.nn.one_hot(a_move[:, 0], N_MOVE, dtype=jnp.float32)
    enc_a = relu(onehot @ params["ae1"] + params["aeb1"]) @ params["ae2"] + params["aeb2"]
    ht = relu(enc_a @ params["wt1a"] + enc @ params["wt1b"] + params["bt1"])
    mu = ht @ params["wt2"] + params["bt2"]
    std = jnp.exp(params["logstd"])
    return a_move, logp, mu, std


if __name__ == "__main__":
    key = jax.random.PRNGKey(0)
    ks = jax.random.split(key, 16)

    def w(k, shape, scale=0.1):
        return (scale * jax.random.normal(k, shape)).astype(jnp.float32)

    states = w(ks[0], (B, S), scale=1.0)
    rnn_hxs = jnp.zeros((B, D), jnp.float32)   # passed through (is_recurrent=False)

    params = {
        # state encoder
        "we": w(ks[1], (S, D)),   "be": jnp.zeros((1, D), jnp.float32),
        # fc["move"]: Linear(D->H), ReLU, Linear(H->N_MOVE)
        "wm1": w(ks[2], (D, H)),  "bm1": w(ks[3], (1, H)),
        "wm2": w(ks[4], (H, N_MOVE)), "bm2": w(ks[5], (1, N_MOVE)),
        # action_encodings["move"]: OneHot(N) -> Linear(N->H), ReLU, Linear(H->D)
        "ae1": w(ks[6], (N_MOVE, H)), "aeb1": w(ks[7], (1, H)),
        "ae2": w(ks[8], (H, D)),      "aeb2": w(ks[9], (1, D)),
        # fc["target"]: Linear(2D->H) split into [enc_a | enc] halves, ReLU, Linear(H->A)
        "wt1a": w(ks[10], (D, H)), "wt1b": w(ks[11], (D, H)), "bt1": w(ks[12], (1, H)),
        "wt2": w(ks[13], (H, A_TGT)), "bt2": w(ks[14], (1, A_TGT)),
        # logstd["target"] initialized to zeros (as in the module)
        "logstd": jnp.zeros((1, A_TGT), jnp.float32),
    }

    wslab, bslab = pack_params(params)   # one-time host-side packing / folding
    fwd = jax.jit(actor_forward)

    actions, dists, rnn_hxs_out = fwd(states, wslab, bslab, rnn_hxs)
    jax.block_until_ready((actions, dists, rnn_hxs_out))

    # correctness check against plain-JAX reference
    ra, rlogp, rmu, rstd = _reference(states, params)
    assert jnp.all(actions["move"] == ra)
    assert jnp.allclose(dists["move"]["log_probs"], rlogp, atol=1e-5)
    assert jnp.allclose(actions["target"], rmu, atol=1e-4)
    assert jnp.allclose(dists["target"]["std"], rstd, atol=1e-6)

    print("KERNEL_OK")
</pallas_src>

<mosaic_0001>
module attributes {stable_mosaic.version = 11 : i64} {
  func.func @actor_kernel(%arg0: memref<2x16xf32, #tpu.memory_space<vmem>>, %arg1: memref<152x128xf32, #tpu.memory_space<vmem>>, %arg2: memref<8x128xf32, #tpu.memory_space<vmem>>, %arg3: memref<8x128xf32, #tpu.memory_space<vmem>>) attributes {dimension_semantics = [], scalar_prefetch = 0 : i64, scratch_operands = 0 : i64, tpu.core_type = #tpu.core_type<tc>} {
    %c0 = arith.constant 0 : index
    %c0_0 = arith.constant 0 : index
    %0 = vector.load %arg0[%c0, %c0_0] : memref<2x16xf32, #tpu.memory_space<vmem>>, vector<2x16xf32>
    %c0_1 = arith.constant 0 : index
    %c0_2 = arith.constant 0 : index
    %1 = vector.load %arg1[%c0_1, %c0_2] : memref<152x128xf32, #tpu.memory_space<vmem>>, vector<16x32xf32>
    %c0_3 = arith.constant 0 : index
    %c0_4 = arith.constant 0 : index
    %2 = vector.load %arg2[%c0_3, %c0_4] : memref<8x128xf32, #tpu.memory_space<vmem>>, vector<1x32xf32>
    %cst = arith.constant dense<0.000000e+00> : vector<2x32xf32>
    %3 = tpu.matmul %0, %1, %cst {dimension_numbers = #tpu.dot_dimension_numbers<[1], [0], [0], [1], [0, 0, 1, 1], [], []>} : vector<2x16xf32>, vector<16x32xf32>, vector<2x32xf32> -> vector<2x32xf32>
    %4 = vector.broadcast %2 : vector<1x32xf32> to vector<2x32xf32>
    %5 = arith.addf %3, %4 : vector<2x32xf32>
    %cst_5 = arith.constant 0.000000e+00 : f32
    %6 = vector.broadcast %cst_5 : f32 to vector<2x32xf32>
    %7 = arith.maximumf %5, %6 : vector<2x32xf32>
    %c16 = arith.constant 16 : index
    %c0_6 = arith.constant 0 : index
    %8 = vector.load %arg1[%c16, %c0_6] : memref<152x128xf32, #tpu.memory_space<vmem>>, vector<32x64xf32>
    %c1 = arith.constant 1 : index
    %c0_7 = arith.constant 0 : index
    %9 = vector.load %arg2[%c1, %c0_7] : memref<8x128xf32, #tpu.memory_space<vmem>>, vector<1x64xf32>
    %cst_8 = arith.constant dense<0.000000e+00> : vector<2x64xf32>
    %10 = tpu.matmul %7, %8, %cst_8 {dimension_numbers = #tpu.dot_dimension_numbers<[1], [0], [0], [1], [0, 0, 1, 1], [], []>} : vector<2x32xf32>, vector<32x64xf32>, vector<2x64xf32> -> vector<2x64xf32>
    %11 = vector.broadcast %9 : vector<1x64xf32> to vector<2x64xf32>
    %12 = arith.addf %10, %11 : vector<2x64xf32>
    %13 = vector.extract_strided_slice %12 {offsets = [0, 0], sizes = [2, 32], strides = [1, 1]} : vector<2x64xf32> to vector<2x32xf32>
    %cst_9 = arith.constant 0.000000e+00 : f32
    %14 = vector.broadcast %cst_9 : f32 to vector<2x32xf32>
    %15 = arith.maximumf %13, %14 : vector<2x32xf32>
    %16 = vector.extract_strided_slice %12 {offsets = [0, 32], sizes = [2, 32], strides = [1, 1]} : vector<2x64xf32> to vector<2x32xf32>
    %c48 = arith.constant 48 : index
    %c0_10 = arith.constant 0 : index
    %17 = vector.load %arg1[%c48, %c0_10] : memref<152x128xf32, #tpu.memory_space<vmem>>, vector<32x5xf32>
    %c2 = arith.constant 2 : index
    %c0_11 = arith.constant 0 : index
    %18 = vector.load %arg2[%c2, %c0_11] : memref<8x128xf32, #tpu.memory_space<vmem>>, vector<1x5xf32>
    %cst_12 = arith.constant dense<0.000000e+00> : vector<2x5xf32>
    %19 = tpu.matmul %15, %17, %cst_12 {dimension_numbers = #tpu.dot_dimension_numbers<[1], [0], [0], [1], [0, 0, 1, 1], [], []>} : vector<2x32xf32>, vector<32x5xf32>, vector<2x5xf32> -> vector<2x5xf32>
    %20 = vector.broadcast %18 : vector<1x5xf32> to vector<2x5xf32>
    %21 = arith.addf %19, %20 : vector<2x5xf32>
    %cst_13 = arith.constant dense<0xFF800000> : vector<2xf32>
    %22 = vector.multi_reduction <maximumf>, %21, %cst_13 [1] : vector<2x5xf32> to vector<2xf32>
    %23 = vector.shape_cast %22 : vector<2xf32> to vector<2x1xf32>
    %24 = vector.broadcast %23 : vector<2x1xf32> to vector<2x5xf32>
    %25 = arith.subf %21, %24 : vector<2x5xf32>
    %26 = math.exp %25 : vector<2x5xf32>
    %cst_14 = arith.constant dense<0.000000e+00> : vector<2xf32>
    %27 = vector.multi_reduction <add>, %26, %cst_14 [1] : vector<2x5xf32> to vector<2xf32>
    %28 = vector.shape_cast %27 : vector<2xf32> to vector<2x1xf32>
    %29 = math.log %28 : vector<2x1xf32>
    %30 = arith.addf %29, %23 : vector<2x1xf32>
    %31 = vector.broadcast %30 : vector<2x1xf32> to vector<2x5xf32>
    %32 = arith.subf %21, %31 : vector<2x5xf32>
    %33 = tpu.iota {dimensions = array<i32: 1>} : vector<2x5xi32>
    %34 = vector.broadcast %23 : vector<2x1xf32> to vector<2x5xf32>
    %35 = arith.cmpf oeq, %21, %34 : vector<2x5xf32>
    %c5_i32 = arith.constant 5 : i32
    %36 = vector.broadcast %c5_i32 : i32 to vector<2x5xi32>
    %37 = arith.select %35, %33, %36 : vector<2x5xi1>, vector<2x5xi32>
    %cst_15 = arith.constant dense<2147483647> : vector<2xi32>
    %38 = vector.multi_reduction <minsi>, %37, %cst_15 [1] : vector<2x5xi32> to vector<2xi32>
    %39 = vector.shape_cast %38 : vector<2xi32> to vector<2x1xi32>
    %c3 = arith.constant 3 : index
    %c0_16 = arith.constant 0 : index
    %40 = vector.load %arg2[%c3, %c0_16] : memref<8x128xf32, #tpu.memory_space<vmem>>, vector<1x32xf32>
    %cst_17 = arith.constant 0.000000e+00 : f32
    %41 = vector.broadcast %cst_17 : f32 to vector<2x32xf32>
    %c0_i32 = arith.constant 0 : i32
    %42 = vector.broadcast %c0_i32 : i32 to vector<2x1xi32>
    %43 = arith.cmpi eq, %39, %42 : vector<2x1xi32>
    %cst_18 = arith.constant 1.000000e+00 : f32
    %cst_19 = arith.constant 0.000000e+00 : f32
    %44 = vector.broadcast %cst_18 : f32 to vector<2x1xf32>
    %45 = vector.broadcast %cst_19 : f32 to vector<2x1xf32>
    %46 = arith.select %43, %44, %45 : vector<2x1xi1>, vector<2x1xf32>
    %c80 = arith.constant 80 : index
    %c0_20 = arith.constant 0 : index
    %47 = vector.load %arg1[%c80, %c0_20] : memref<152x128xf32, #tpu.memory_space<vmem>>, vector<1x32xf32>
    %48 = vector.broadcast %46 : vector<2x1xf32> to vector<2x32xf32>
    %49 = vector.broadcast %47 : vector<1x32xf32> to vector<2x32xf32>
    %50 = arith.mulf %48, %49 : vector<2x32xf32>
    %51 = arith.addf %41, %50 : vector<2x32xf32>
    %c1_i32 = arith.constant 1 : i32
    %52 = vector.broadcast %c1_i32 : i32 to vector<2x1xi32>
    %53 = arith.cmpi eq, %39, %52 : vector<2x1xi32>
    %cst_21 = arith.constant 1.000000e+00 : f32
    %cst_22 = arith.constant 0.000000e+00 : f32
    %54 = vector.broadcast %cst_21 : f32 to vector<2x1xf32>
    %55 = vector.broadcast %cst_22 : f32 to vector<2x1xf32>
    %56 = arith.select %53, %54, %55 : vector<2x1xi1>, vector<2x1xf32>
    %c81 = arith.constant 81 : index
    %c0_23 = arith.constant 0 : index
    %57 = vector.load %arg1[%c81, %c0_23] : memref<152x128xf32, #tpu.memory_space<vmem>>, vector<1x32xf32>
    %58 = vector.broadcast %56 : vector<2x1xf32> to vector<2x32xf32>
    %59 = vector.broadcast %57 : vector<1x32xf32> to vector<2x32xf32>
    %60 = arith.mulf %58, %59 : vector<2x32xf32>
    %61 = arith.addf %51, %60 : vector<2x32xf32>
    %c2_i32 = arith.constant 2 : i32
    %62 = vector.broadcast %c2_i32 : i32 to vector<2x1xi32>
    %63 = arith.cmpi eq, %39, %62 : vector<2x1xi32>
    %cst_24 = arith.constant 1.000000e+00 : f32
    %cst_25 = arith.constant 0.000000e+00 : f32
    %64 = vector.broadcast %cst_24 : f32 to vector<2x1xf32>
    %65 = vector.broadcast %cst_25 : f32 to vector<2x1xf32>
    %66 = arith.select %63, %64, %65 : vector<2x1xi1>, vector<2x1xf32>
    %c82 = arith.constant 82 : index
    %c0_26 = arith.constant 0 : index
    %67 = vector.load %arg1[%c82, %c0_26] : memref<152x128xf32, #tpu.memory_space<vmem>>, vector<1x32xf32>
    %68 = vector.broadcast %66 : vector<2x1xf32> to vector<2x32xf32>
    %69 = vector.broadcast %67 : vector<1x32xf32> to vector<2x32xf32>
    %70 = arith.mulf %68, %69 : vector<2x32xf32>
    %71 = arith.addf %61, %70 : vector<2x32xf32>
    %c3_i32 = arith.constant 3 : i32
    %72 = vector.broadcast %c3_i32 : i32 to vector<2x1xi32>
    %73 = arith.cmpi eq, %39, %72 : vector<2x1xi32>
    %cst_27 = arith.constant 1.000000e+00 : f32
    %cst_28 = arith.constant 0.000000e+00 : f32
    %74 = vector.broadcast %cst_27 : f32 to vector<2x1xf32>
    %75 = vector.broadcast %cst_28 : f32 to vector<2x1xf32>
    %76 = arith.select %73, %74, %75 : vector<2x1xi1>, vector<2x1xf32>
    %c83 = arith.constant 83 : index
    %c0_29 = arith.constant 0 : index
    %77 = vector.load %arg1[%c83, %c0_29] : memref<152x128xf32, #tpu.memory_space<vmem>>, vector<1x32xf32>
    %78 = vector.broadcast %76 : vector<2x1xf32> to vector<2x32xf32>
    %79 = vector.broadcast %77 : vector<1x32xf32> to vector<2x32xf32>
    %80 = arith.mulf %78, %79 : vector<2x32xf32>
    %81 = arith.addf %71, %80 : vector<2x32xf32>
    %c4_i32 = arith.constant 4 : i32
    %82 = vector.broadcast %c4_i32 : i32 to vector<2x1xi32>
    %83 = arith.cmpi eq, %39, %82 : vector<2x1xi32>
    %cst_30 = arith.constant 1.000000e+00 : f32
    %cst_31 = arith.constant 0.000000e+00 : f32
    %84 = vector.broadcast %cst_30 : f32 to vector<2x1xf32>
    %85 = vector.broadcast %cst_31 : f32 to vector<2x1xf32>
    %86 = arith.select %83, %84, %85 : vector<2x1xi1>, vector<2x1xf32>
    %c84 = arith.constant 84 : index
    %c0_32 = arith.constant 0 : index
    %87 = vector.load %arg1[%c84, %c0_32] : memref<152x128xf32, #tpu.memory_space<vmem>>, vector<1x32xf32>
    %88 = vector.broadcast %86 : vector<2x1xf32> to vector<2x32xf32>
    %89 = vector.broadcast %87 : vector<1x32xf32> to vector<2x32xf32>
    %90 = arith.mulf %88, %89 : vector<2x32xf32>
    %91 = arith.addf %81, %90 : vector<2x32xf32>
    %92 = vector.broadcast %40 : vector<1x32xf32> to vector<2x32xf32>
    %93 = arith.addf %91, %92 : vector<2x32xf32>
    %cst_33 = arith.constant 0.000000e+00 : f32
    %94 = vector.broadcast %cst_33 : f32 to vector<2x32xf32>
    %95 = arith.maximumf %93, %94 : vector<2x32xf32>
    %c88 = arith.constant 88 : index
    %c0_34 = arith.constant 0 : index
    %96 = vector.load %arg1[%c88, %c0_34] : memref<152x128xf32, #tpu.memory_space<vmem>>, vector<32x32xf32>
    %cst_35 = arith.constant dense<0.000000e+00> : vector<2x32xf32>
    %97 = tpu.matmul %95, %96, %cst_35 {dimension_numbers = #tpu.dot_dimension_numbers<[1], [0], [0], [1], [0, 0, 1, 1], [], []>} : vector<2x32xf32>, vector<32x32xf32>, vector<2x32xf32> -> vector<2x32xf32>
    %98 = arith.addf %97, %16 : vector<2x32xf32>
    %cst_36 = arith.constant 0.000000e+00 : f32
    %99 = vector.broadcast %cst_36 : f32 to vector<2x32xf32>
    %100 = arith.maximumf %98, %99 : vector<2x32xf32>
    %c120 = arith.constant 120 : index
    %c0_37 = arith.constant 0 : index
    %101 = vector.load %arg1[%c120, %c0_37] : memref<152x128xf32, #tpu.memory_space<vmem>>, vector<32x3xf32>
    %c4 = arith.constant 4 : index
    %c0_38 = arith.constant 0 : index
    %102 = vector.load %arg2[%c4, %c0_38] : memref<8x128xf32, #tpu.memory_space<vmem>>, vector<1x3xf32>
    %cst_39 = arith.constant dense<0.000000e+00> : vector<2x3xf32>
    %103 = tpu.matmul %100, %101, %cst_39 {dimension_numbers = #tpu.dot_dimension_numbers<[1], [0], [0], [1], [0, 0, 1, 1], [], []>} : vector<2x32xf32>, vector<32x3xf32>, vector<2x3xf32> -> vector<2x3xf32>
    %104 = vector.broadcast %102 : vector<1x3xf32> to vector<2x3xf32>
    %105 = arith.addf %103, %104 : vector<2x3xf32>
    %c5 = arith.constant 5 : index
    %c0_40 = arith.constant 0 : index
    %106 = vector.load %arg2[%c5, %c0_40] : memref<8x128xf32, #tpu.memory_space<vmem>>, vector<1x3xf32>
    %107 = math.exp %106 : vector<1x3xf32>
    %cst_41 = arith.constant 0.000000e+00 : f32
    %108 = vector.broadcast %cst_41 : f32 to vector<8x128xf32>
    %c0_42 = arith.constant 0 : index
    %c0_43 = arith.constant 0 : index
    %109 = vector.load %arg3[%c0_42, %c0_43] : memref<8x128xf32, #tpu.memory_space<vmem>>, vector<8x128xf32>
    tpu.vector_store %arg3[%c0_42, %c0_43], %108 {strides = array<i32>} : memref<8x128xf32, #tpu.memory_space<vmem>>, vector<8x128xf32>,
    %c0_44 = arith.constant 0 : index
    %c0_45 = arith.constant 0 : index
    %110 = vector.load %arg3[%c0_44, %c0_45] : memref<8x128xf32, #tpu.memory_space<vmem>>, vector<2x5xf32>
    tpu.vector_store %arg3[%c0_44, %c0_45], %32 {strides = array<i32>} : memref<8x128xf32, #tpu.memory_space<vmem>>, vector<2x5xf32>,
    %c0_46 = arith.constant 0 : index
    %c8 = arith.constant 8 : index
    %111 = vector.load %arg3[%c0_46, %c8] : memref<8x128xf32, #tpu.memory_space<vmem>>, vector<2x3xf32>
    tpu.vector_store %arg3[%c0_46, %c8], %105 {strides = array<i32>} : memref<8x128xf32, #tpu.memory_space<vmem>>, vector<2x3xf32>,
    %112 = arith.sitofp %39 : vector<2x1xi32> to vector<2x1xf32>
    %c0_47 = arith.constant 0 : index
    %c16_48 = arith.constant 16 : index
    %113 = vector.load %arg3[%c0_47, %c16_48] : memref<8x128xf32, #tpu.memory_space<vmem>>, vector<2x1xf32>
    tpu.vector_store %arg3[%c0_47, %c16_48], %112 {strides = array<i32>} : memref<8x128xf32, #tpu.memory_space<vmem>>, vector<2x1xf32>,
    %c0_49 = arith.constant 0 : index
    %c24 = arith.constant 24 : index
    %114 = vector.load %arg3[%c0_49, %c24] : memref<8x128xf32, #tpu.memory_space<vmem>>, vector<1x3xf32>
    tpu.vector_store %arg3[%c0_49, %c24], %107 {strides = array<i32>} : memref<8x128xf32, #tpu.memory_space<vmem>>, vector<1x3xf32>,
    return
  }
}

</mosaic_0001>

<bundles_post_ra>
// kernel: actor_forward.1
= control target key start
LH: loop header
LB: loop body
LE: loop exit
PB: predicated region body
PF: predicated region fallthrough
CT: control target
= control target key end

     0   :  { %8 = vsyncpa [#allocation3], 0  ;;  %s849_s0 = inlined_call_operand.vmem [shape: f32[2,16], index: 0, kind: input, shape index: {}]   ;;  %s850_s1 = inlined_call_operand.hbm [shape: f32[152,128], index: 1, kind: input, shape index: {}]   ;;  %s851_s2 = inlined_call_operand.hbm [shape: f32[8,128], index: 2, kind: input, shape index: {}]   ;;  %s852_s3 = inlined_call_operand.vmem [shape: f32[8,128], index: 3, kind: output, shape index: {}]  }
   0x1   :  { %9 = vsyncpa [#allocation5], 0  ;;  %s743_s12 = smov [#allocation2]   ;;  %s695_s16 = scalar_lea.hbm %s850_s1, 2432 }
   0x2   :  { %s17_s13 = sshll.u32 %s743_s12, 4  ;;  %p696_p0 = scmp.ne.s32.totalorder %s850_s1, %s695_s16  ;;  %s18_s13 = int_to_ptr.vmem [resolvable:$true] %s17_s13 }
   0x3   :  { %p699_p1 = scmp.lt.u32.totalorder %s695_s16, %s850_s1 }
   0x5   :  { %p701_p2 = pnand %p699_p1, %p696_p0 }
   0x7   :  { %704 = shalt.err (!%p701_p2)
}
   0x8   :  { %s705_s21 = scalar_lea.vmem %s18_s13, 2432  ;;  %p710_p4 = scmp.lt.s32.totalorder %s18_s13, %s18_s13 }
   0x9   :  { %p706_p3 = scmp.ne.s32.totalorder %s18_s13, %s705_s21  ;;  %p711_p5 = scmp.lt.s32.totalorder %s705_s21, %s705_s21 }
   0xb   :  { %p712_p6 = por %p711_p5, %p710_p4 }
   0xd   :  { %p713_p7 = pnand %p712_p6, %p706_p3 }
   0xf   :  { %716 = shalt.err (!%p713_p7)
}
  0x10   :  { %s744_s22 = smov 128   ;;  %s745_s23 = smov 8  }
  0x11   :  { %23 = dma.hbm_to_vmem [thread:$0]  %s850_s1, 2432, %s18_s13, [#allocation3], %s744_s22, %s744_s22, %s745_s23  }
  0x12   :  { %s746_s26 = smov [#allocation4]   ;;  %s717_s30 = scalar_lea.hbm %s851_s2, 128 }
  0x13   :  { %s30_s27 = sshll.u32 %s746_s26, 4  ;;  %p718_p8 = scmp.ne.s32.totalorder %s851_s2, %s717_s30  ;;  %s31_s27 = int_to_ptr.vmem [resolvable:$true] %s30_s27 }
  0x14   :  { %p721_p9 = scmp.lt.u32.totalorder %s717_s30, %s851_s2 }
  0x16   :  { %p723_p10 = pnand %p721_p9, %p718_p8 }
  0x18   :  { %726 = shalt.err (!%p723_p10)
}
  0x19   :  { %s727_s8 = scalar_lea.vmem %s31_s27, 128  ;;  %p732_p12 = scmp.lt.s32.totalorder %s31_s27, %s31_s27 }
  0x1a   :  { %p728_p11 = scmp.ne.s32.totalorder %s31_s27, %s727_s8  ;;  %p733_p13 = scmp.lt.s32.totalorder %s727_s8, %s727_s8 }
  0x1c   :  { %p734_p0 = por %p733_p13, %p732_p12 }
  0x1e   :  { %p735_p1 = pnand %p734_p0, %p728_p11 }
  0x20   :  { %738 = shalt.err (!%p735_p1)
}
  0x21   :  { %33 = dma.hbm_to_vmem [thread:$0]  %s851_s2, 128, %s31_s27, [#allocation5]  }
  0x22   :  { %739 = dma.done.wait [#allocation3], 2432  }
  0x23   :  { %740 = vsyncadd [#allocation3], 4294964864 }
  0x24   :  { %741 = dma.done.wait [#allocation5], 128  }
  0x25   :  { %742 = vsyncadd [#allocation5], 4294967168  ;;  %v747_v0 = vmov 0.0|0.0   ;;  %vm748_vm0 = vmmov 0   ;;  %v749_v1 = vmov 0.0   ;;  %v41_v2 = vld [vmem:[#allocation2] sm:$0xff]  ;;  %v303_v33 = vlaneseq }
  0x26   :  { %653 = vmatprep.subr.bf16.mxu0 %v747_v0  ;;  %606 = vmatprep.mubr.msk.f32.mxu0 %vm748_vm0, %v749_v1  ;;  %541 = vst [vmem:[%s852_s3] sm:$0xff] %v749_v1  ;;  %v42_v3 = vld [vmem:[#allocation2 + $0x8] sm:$0xff]  ;;  %v123_v5 = vld [vmem:[#allocation2 + $0x10] sm:$0xff]  ;;  %v124_v6 = vld [vmem:[#allocation2 + $0x18] sm:$0xff]  ;;  %vm48_vm1 = vcmask 130048   ;;  %vm132_vm2 = vcmask 261120   ;;  %vm289_vm3 = vcmask 33792  }
  0x27   :  { %656 = vmatprep.subr.bf16.mxu1 %v747_v0  ;;  %617 = vmatprep.mubr.msk.f32.mxu1 %vm748_vm0, %v749_v1  ;;  %v654_v4 = vpack.c.bf16 %v42_v3, %v41_v2  ;;  %v657_v7 = vpack.c.bf16 %v124_v6, %v123_v5  ;;  %v40_v8 = vld [vmem:[%s849_s0] sm:$0x3]  ;;  %v126_v10 = vld [vmem:[#allocation2 + $0x28] sm:$0xff]  ;;  %v207_v12 = vld [vmem:[#allocation2 + $0x30] sm:$0xff]  ;;  %v304_v34 = vand.u32 127, %v303_v33  ;;  %s750_s0 = smov 96  }
  0x28   :  { %v125_v9 = vld [vmem:[#allocation2 + $0x20] sm:$0xff]  ;;  %v208_v13 = vld [vmem:[#allocation2 + $0x38] sm:$0xff]  ;;  %v210_v21 = vld [vmem:[#allocation2 + $0x48] sm:$0xff]  ;;  %s751_s15 = smov 24   ;;  %vm547_vm11 = vcmask 83008   ;;  %vm550_vm12 = vcmask 132224  }
  0x29   :  { %655 = vmatpush3.bf16.msra.mxu0 %v654_v4  ;;  %658 = vmatpush3.bf16.msra.mxu1 %v657_v7  ;;  %v660_v11 = vpack.c.bf16 %v126_v10, %v125_v9  ;;  %v663_v14 = vpack.c.bf16 %v208_v13, %v207_v12  ;;  %v564_v15 = vld [vmem:[#allocation4] ss:$0 sm:$0xff]  ;;  %v209_v20 = vld [vmem:[#allocation2 + $0x40] sm:$0xff]  ;;  %v566_v23 = vld [vmem:[#allocation4 + $0x1] ss:$0 sm:$0xff]  ;;  %vm556_vm13 = vcmask 213184  }
  0x2a   :  { %662 = vmatprep.subr.bf16.mxu0 %v747_v0  ;;  %659 = vmatprep.subr.bf16.mxu1 %v747_v0  ;;  %v666_v22 = vpack.c.bf16 %v210_v21, %v209_v20  ;;  %v568_v28 = vld [vmem:[#allocation4 + $0x2] ss:$0 sm:$0xff]  ;;  %v375_v52 = vld [vmem:[#allocation2 + $0x60] sm:$0xff]  ;;  %v376_v53 = vld [vmem:[#allocation2 + $0x68] sm:$0xff] }
  0x2b   :  { %v374_v51 = vld [vmem:[#allocation2 + $0x58] sm:$0xff]  ;;  %v377_v56 = vld [vmem:[#allocation2 + $0x70] sm:$0xff]  ;;  %v457_v60 = vld [vmem:[#allocation2 + $0x80] sm:$0xff] }
  0x2c   :  { %607 = vmatmul.mubr.msk.f32.vlgmr.msra.gmra.mrb[0].mxu0 %vm48_vm1, %v40_v8  ;;  %v669_v55 = vpack.c.bf16 %v375_v52, %v374_v51  ;;  %v672_v58 = vpack.c.bf16 %v377_v56, %v376_v53  ;;  %v456_v59 = vld [vmem:[#allocation2 + $0x78] sm:$0xff]  ;;  %v570_v5 = vld [vmem:[#allocation2 + $0x50] ss:$0 sm:$0xff]  ;;  %v571_v6 = vld [vmem:[#allocation2 + $0x51] ss:$0 sm:$0xff] }
  0x2d   :  { %628 = vmatprep.mubr.msk.f32.mxu0 %vm748_vm0, %v749_v1  ;;  %661 = vmatpush3.bf16.msra.mxu1 %v660_v11  ;;  %v675_v61 = vpack.c.bf16 %v457_v60, %v456_v59  ;;  %v572_v10 = vld [vmem:[#allocation2 + $0x52] ss:$0 sm:$0xff]  ;;  %v573_v13 = vld [vmem:[#allocation2 + $0x53] ss:$0 sm:$0xff]  ;;  %v538_v33 = vld [vmem:[#allocation4 + $0x5] sm:$0x1] }
  0x2e   :  { %668 = vmatprep.subr.bf16.mxu1 %v747_v0  ;;  %664 = vmatpush3.bf16.msra.mxu0 %v663_v14 }
  0x2f   :  { %665 = vmatprep.subr.bf16.mxu0 %v747_v0 }
  0x32   :  { %667 = vmatpush3.bf16.msra.mxu0 %v666_v22  ;;  %v575_v22 = vld [vmem:[#allocation4 + $0x3] ss:$0 sm:$0xff] }
  0x33   :  { %674 = vmatprep.subr.bf16.mxu0 %v747_v0 }
  0xff   :  { %v118_v16 = vpop.f32.mrb[0].mxu0 }
 0x100   :  { %v119_v17 = vadd.f32 %v564_v15, %v118_v16  ;;  %v608_v18 = vpop.f32.mrb[1].mxu0 }
 0x102   :  { %v122_v19 = vmax.f32 %v119_v17, 0.0  ;;  %v574_v17 = vld [vmem:[#allocation2 + $0x54] ss:$0 sm:$0xff] }
 0x104   :  { %618 = vmatmul.mubr.msk.f32.vlgmr.msra.gmra.mrb[0].mxu1 %vm132_vm2, %v122_v19 }
 0x105   :  { %639 = vmatprep.mubr.msk.f32.mxu1 %vm748_vm0, %v749_v1  ;;  %670 = vmatpush3.bf16.msra.mxu1 %v669_v55 }
 0x106   :  { %671 = vmatprep.subr.bf16.mxu1 %v747_v0 }
 0x109   :  { %673 = vmatpush3.bf16.msra.mxu1 %v672_v58 }
 0x1d7   :  { %v202_v24 = vpop.f32.mrb[0].mxu1 }
 0x1d8   :  { %v203_v25 = vadd.f32 %v566_v23, %v202_v24  ;;  %v619_v26 = vpop.f32.mrb[1].mxu1 }
 0x1d9   :  { %v458_v26 = vld [vmem:[#allocation2 + $0x88] sm:$0xff] }
 0x1da   :  { %v206_v27 = vmax.f32 %v203_v25, 0.0 }
 0x1dc   :  { %629 = vmatmul.mubr.msk.f32.vlgmr.msra.gmra.mrb[2].mxu0 %vm132_vm2, %v206_v27  ;;  %v459_v27 = vld [vmem:[#allocation2 + $0x90] sm:$0xff] }
 0x1dd   :  { %650 = vmatprep.mubr.msk.f32.mxu0 %vm748_vm0, %v749_v1  ;;  %676 = vmatpush3.bf16.msra.mxu0 %v675_v61 }
 0x1de   :  { %677 = vmatprep.subr.bf16.mxu0 %v747_v0 }
 0x2af   :  { %v285_v29 = vpop.f32.mrb[2].mxu0 }
 0x2b0   :  { %v286_v30 = vadd.f32 %v568_v28, %v285_v29  ;;  %v630_v31 = vpop.f32.mrb[3].mxu0  ;;  %v678_v28 = vpack.c.bf16 %v459_v27, %v458_v26 }
 0x2b2   :  { %v290_v32 = vsel %vm289_vm3, %v286_v30, -inf  ;;  %679 = vmatpush3.bf16.msra.mxu0 %v678_v28 }
 0x2b3   :  { %291 = vmax.xlane.f32.xlu0 %v290_v32 }
 0x340   :  { %v292_v35 = vpop.xlane.xlu0 %291 }
 0x341   :  { %v293_v36 = vsub.f32 %v286_v30, %v292_v35  ;;  %vm305_vm4 = vcmp.eq.f32.partialorder %v286_v30, %v292_v35 }
 0x342   :  { %v306_v37 = vsel %vm305_vm4, %v304_v34, 5  ;;  %v539_v34 = vmul.f32 1.442695, %v538_v33 }
 0x343   :  { %v294_v38 = vmul.f32 1.442695, %v293_v36  ;;  %v307_v39 = vsel %vm289_vm3, %v306_v37, 2147483647  ;;  %v577_v36 = vld [vmem:[#allocation4 + $0x4] ss:$0 sm:$0xff] }
 0x344   :  { %v309_v40 = vshra.s32 %v307_v39, 16  ;;  %v308_v44 = vand.u32 65535, %v307_v39 }
 0x345   :  { %689 = vpow2.f32 %v294_v38 }
 0x346   :  { %v311_v41 = vcvt.s32.f32 %v309_v40  ;;  %v310_v46 = vcvt.s32.f32 %v308_v44 }
 0x348   :  { %312 = vmin.xlane.f32.xlu0 %v311_v41 }
 0x34f   :  { %v690_v42 = vpop.eup %689 }
 0x350   :  { %v296_v43 = vsel %vm289_vm3, %v690_v42, 0.0 }
 0x351   :  { %297 = vadd.xlane.f32.xlu0 %v296_v43 }
 0x3d5   :  { %v313_v45 = vpop.xlane.xlu0 %312 }
 0x3d6   :  { %vm314_vm5 = vcmp.eq.f32.partialorder %v311_v41, %v313_v45  ;;  %v319_v62 = vcvt.f32.s32 %v313_v45 }
 0x3d7   :  { %v315_v47 = vsel %vm314_vm5, %v310_v46, inf }
 0x3d8   :  { %316 = vmin.xlane.f32.xlu1 %v315_v47  ;;  %v320_v2 = vshll.u32 %v319_v62, 16 }
 0x3de   :  { %v298_v48 = vpop.xlane.xlu0 %297 }
 0x3df   :  { %691 = vlog2.f32 %v298_v48 }
 0x3e0   :  { %693 = vpow2.f32 %v539_v34 }
 0x3e9   :  { %v692_v49 = vpop.eup %691  ;;  %379 = vrot.lane.b32.xlu1 %v203_v25, %s750_s0 }
 0x3ea   :  { %v300_v50 = vmul.f32 0.6931472, %v692_v49 }
 0x3ec   :  { %v301_v54 = vadd.f32 %v300_v50, %v292_v35  ;;  %v694_v35 = vpop.eup %693 }
 0x3ed   :  { %553 = vrot.lane.b32.xlu1 %v694_v35, %s751_s15 }
 0x3ee   :  { %v302_v57 = vsub.f32 %v286_v30, %v301_v54 }
 0x3f0   :  { %542 = vst.msk [vmem:[%s852_s3] sm:$0x3] %vm289_vm3, %v302_v57 }
 0x465   :  { %v317_v63 = vpop.xlane.xlu1 %316 }
 0x466   :  { %v318_v3 = vcvt.f32.s32 %v317_v63 }
 0x468   :  { %v321_v4 = vadd.s32 %v320_v2, %v318_v3 }
 0x469   :  { %v380_v29 = vpop.permute.xlu1 %379 }
 0x46a   :  { %vm323_vm6 = vcmp.eq.s32.totalorder %v321_v4, 0  ;;  %vm332_vm7 = vcmp.eq.s32.totalorder %v321_v4, 1  ;;  %vm341_vm8 = vcmp.eq.s32.totalorder %v321_v4, 2  ;;  %vm350_vm9 = vcmp.eq.s32.totalorder %v321_v4, 3 }
 0x46b   :  { %v324_v7 = vsel %vm323_vm6, 1.0, %v749_v1  ;;  %v333_v8 = vsel %vm332_vm7, 1.0, %v749_v1  ;;  %v342_v9 = vsel %vm341_vm8, 1.0, %v749_v1  ;;  %v351_v12 = vsel %vm350_vm9, 1.0, %v749_v1 }
 0x46c   :  { %v330_v11 = vmul.f32 %v570_v5, %v324_v7  ;;  %v339_v0 = vmul.f32 %v571_v6, %v333_v8  ;;  %vm359_vm10 = vcmp.eq.s32.totalorder %v321_v4, 4  ;;  %v348_v15 = vmul.f32 %v572_v10, %v342_v9 }
 0x46d   :  { %v360_v16 = vsel %vm359_vm10, 1.0, %v749_v1  ;;  %v357_v19 = vmul.f32 %v573_v13, %v351_v12  ;;  %v549_v41 = vcvt.s32.f32 %v321_v4  ;;  %v554_v42 = vpop.permute.xlu1 %553 }
 0x46e   :  { %v340_v14 = vadd.f32 %v339_v0, %v330_v11  ;;  %v366_v21 = vmul.f32 %v574_v17, %v360_v16 }
 0x470   :  { %v349_v18 = vadd.f32 %v348_v15, %v340_v14 }
 0x472   :  { %v358_v20 = vadd.f32 %v357_v19, %v349_v18 }
 0x474   :  { %v367_v23 = vadd.f32 %v366_v21, %v358_v20 }
 0x476   :  { %v372_v24 = vadd.f32 %v575_v22, %v367_v23 }
 0x478   :  { %v373_v25 = vmax.f32 %v372_v24, 0.0 }
 0x47a   :  { %640 = vmatmul.mubr.msk.f32.vlgmr.msra.gmra.mrb[2].mxu1 %vm132_vm2, %v373_v25 }
 0x54d   :  { %v451_v30 = vpop.f32.mrb[2].mxu1 }
 0x54e   :  { %v452_v31 = vadd.f32 %v451_v30, %v380_v29  ;;  %v641_v32 = vpop.f32.mrb[3].mxu1 }
 0x550   :  { %v455_v1 = vmax.f32 %v452_v31, 0.0 }
 0x552   :  { %651 = vmatmul.mubr.msk.f32.vlgmr.msra.gmra.mrb[4].mxu0 %vm132_vm2, %v455_v1 }
 0x625   :  { %v534_v37 = vpop.f32.mrb[4].mxu0 }
 0x626   :  { %v535_v38 = vadd.f32 %v577_v36, %v534_v37  ;;  %v652_v39 = vpop.f32.mrb[5].mxu0 }
 0x628   :  { %544 = vrot.lane.b32.xlu0 %v535_v38, %s745_s23 }
 0x69a   :  { %v545_v40 = vpop.permute.xlu0 %544 }
 0x69b   :  { %548 = vst.msk [vmem:[%s852_s3] sm:$0x3] %vm547_vm11, %v545_v40 }
 0x69c   :  { %551 = vst.msk [vmem:[%s852_s3] sm:$0x3] %vm550_vm12, %v549_v41 }
 0x69d   :  { %557 = vst.msk [vmem:[%s852_s3] sm:$0x1] %vm556_vm13, %v554_v42 }
 0x69e   :  { %562 = vsyncpa [#allocation3], 1 }
 0x69f   :  { %563 = vsyncpa [#allocation5], 1 }

</bundles_post_ra>
